<compile_context>
chip_gen: v5e
topology: v5e:2x2
jax: 0.10.0
libtpu: 0.0.40
codegen_flags: <defaults>
</compile_context>

<pallas_src>
import numpy as np
import jax
import jax.numpy as jnp
from jax import lax
from jax.experimental import pallas as pl
from jax.experimental.pallas import tpu as pltpu

_BN_EPS = 1e-5
_LANE = 128
_VMEM = pl.BlockSpec(memory_space=pltpu.MemorySpace.VMEM)


def _round_up(n, m):
    return ((n + m - 1) // m) * m


# ----------------------------------------------------------------------------
# Weights-only preprocessing (pure numpy, runs ONCE at build time).
# ----------------------------------------------------------------------------
def _fold_tconv_np(w_pt, stride, K, in_chw, out_chw, in_pad, out_pad):
    """Fold ConvTranspose2d(stride, output_size=out) into a dense matrix M so
    that y_flat = x_flat @ M, both NCHW-flat and zero-padded to lane-dense
    widths (padded rows/columns are zero)."""
    Cin, Hin, Win = in_chw
    Cout, Hout, Wout = out_chw
    w = np.asarray(w_pt, np.float32)
    assert w.shape == (Cin, Cout, K, K), (w.shape, in_chw, out_chw)
    op_h = Hout - ((Hin - 1) * stride + K)
    op_w = Wout - ((Win - 1) * stride + K)
    # output_size implies output_padding; PyTorch requires 0 <= op < stride.
    assert 0 <= op_h < stride and 0 <= op_w < stride, (op_h, op_w)

    ih, iw, ci, co, kh, kw = np.meshgrid(
        np.arange(Hin), np.arange(Win), np.arange(Cin), np.arange(Cout),
        np.arange(K), np.arange(K), indexing="ij")
    rows = ((ci * Hin + ih) * Win + iw).ravel()
    cols = ((co * Hout + (ih * stride + kh)) * Wout + (iw * stride + kw)).ravel()
    M = np.zeros((in_pad, out_pad), np.float32)
    M[rows, cols] = w[ci.ravel(), co.ravel(), kh.ravel(), kw.ravel()]  # unique pairs
    return M


# ----------------------------------------------------------------------------
# Fused decoder kernel: dense+ReLU -> [tconv + BN(train) (+ReLU)] * L
# All activations live in vregs/VMEM; every store is lane-dense.
# ----------------------------------------------------------------------------
def _make_fused_decoder_kernel(plan, eps):
    """`plan` is a static tuple of layer descriptors, consumed left-to-right."""

    def kernel(*refs):
        o_ref = refs[-1]
        h = refs[0][...].astype(jnp.float32)
        idx = 1
        for ent in plan:
            if ent["kind"] == "dense":
                slab = refs[idx]
                idx += 1
                kdim = ent["kdim"]
                w = slab[0:kdim, :]                  # (K, out_pad)
                b = slab[kdim:kdim + 1, :]           # (1, out_pad)
                h = jnp.dot(h, w, preferred_element_type=jnp.float32) + b
                h = jnp.maximum(h, 0.0)              # dense_activ = ReLU
            else:  # ConvTranspose2d + BatchNorm2d(train) [+ ReLU]
                m_ref = refs[idx]
                aux = refs[idx + 1]
                idx += 2
                cout = ent["cout"]
                inv_n = ent["inv_n"]
                b_pos = aux[0:1, :]
                beta_pos = aux[1:2, :]

                # The whole transposed conv is ONE lane-dense GEMM.
                y = jnp.dot(h, m_ref[...], preferred_element_type=jnp.float32) + b_pos

                ysum = jnp.sum(y, axis=0, keepdims=True)       # (1, P)
                ysq = jnp.sum(y * y, axis=0, keepdims=True)    # (1, P)

                if cout > 1:
                    s_ref = refs[idx]
                    idx += 1
                    # One MXU op for BOTH BN moments: (2,P) @ (P,C).
                    row = lax.broadcasted_iota(jnp.int32, (2, y.shape[1]), 0)
                    stacked = jnp.where(row == 0, ysum, ysq)
                    stats = jnp.dot(stacked, s_ref[...],
                                    preferred_element_type=jnp.float32)  # (2, C)
                    mean = stats[0:1, :] * inv_n
                    var = jnp.maximum(stats[1:2, :] * inv_n - mean * mean, 0.0)
                    inv_std = lax.rsqrt(var + eps)
                    # One MXU op to broadcast [scale; shift-beta] to positions;
                    # gamma is pre-folded into the selector rows of the aux slab.
                    row_c = lax.broadcasted_iota(jnp.int32, (2, cout), 0)
                    coef = jnp.where(row_c == 0, inv_std, -mean * inv_std)  # (2, C)
                    st_gamma = aux[8:8 + cout, :]                           # (C, P)
                    pos = jnp.dot(coef, st_gamma,
                                  preferred_element_type=jnp.float32)       # (2, P)
                    h = y * pos[0:1, :] + pos[1:2, :] + beta_pos
                else:
                    # Single channel: padded columns of y are exactly zero, so
                    # plain full sums equal the per-channel sums (inv_n uses the
                    # real element count).
                    s1 = jnp.sum(ysum, axis=1, keepdims=True)   # (1, 1)
                    s2 = jnp.sum(ysq, axis=1, keepdims=True)    # (1, 1)
                    mean = s1 * inv_n
                    var = jnp.maximum(s2 * inv_n - mean * mean, 0.0)
                    inv_std = lax.rsqrt(var + eps)
                    gamma_pos = aux[2:3, :]
                    h = (y - mean) * inv_std * gamma_pos + beta_pos
                if ent["relu"]:
                    h = jnp.maximum(h, 0.0)          # c_activ = ReLU
        o_ref[...] = h.astype(o_ref.dtype)

    return kernel


# ----------------------------------------------------------------------------
# DynamicDecoder.forward builder: fold weights once, return a fast forward().
# ----------------------------------------------------------------------------
def build_decoder(params, config, shapes, batch_size):
    """Weights-only preprocessing (numpy, once).  The returned forward() calls
    a single cached pallas_call per invocation."""
    K, stride = config["c_kernel"], config["c_stride"]
    B = batch_size
    plan, np_args = [], []
    cur_chw = None                    # (C,H,W) of the NCHW-flat activation
    cur_len = None                    # valid lane count
    cur_pad = None                    # padded (128-multiple) lane count
    final_chw = None
    c = -1
    for i in range(len(shapes) - 1, -1, -1):
        name, shape = shapes[i]
        if name == "dense":
            wd, bd = params["dense"]                 # nn.Linear(shape[1] -> shape[0])
            wd = np.asarray(wd, np.float32)          # (out, in)
            bd = np.asarray(bd, np.float32)
            out_len, kdim = wd.shape
            out_pad = _round_up(out_len, _LANE)
            slab = np.zeros((kdim + 1, out_pad), np.float32)
            slab[:kdim, :out_len] = wd.T
            slab[kdim, :out_len] = bd
            plan.append({"kind": "dense", "kdim": kdim})
            np_args.append(slab)
            cur_len, cur_pad = out_len, out_pad
            # dropout == nn.Identity (use_dropout=False)
        elif name == "flatten":
            cur_chw = tuple(int(s) for s in shape[1:])
            assert cur_len == cur_chw[0] * cur_chw[1] * cur_chw[2]
        elif name == "conv":
            p = params["tconvs"][c]                  # negative indexing, like torch
            out_chw = tuple(int(s) for s in shape[1:])
            Cout, Hout, Wout = out_chw
            hw = Hout * Wout
            out_len = Cout * hw
            out_pad = _round_up(out_len, _LANE)
            M = _fold_tconv_np(p["w"], stride, K, cur_chw, out_chw, cur_pad, out_pad)
            bias = np.asarray(p["b"], np.float32)
            gamma = np.asarray(p["gamma"], np.float32)
            beta = np.asarray(p["beta"], np.float32)
            b_pos = np.zeros((out_pad,), np.float32)
            b_pos[:out_len] = np.repeat(bias, hw)
            beta_pos = np.zeros((out_pad,), np.float32)
            beta_pos[:out_len] = np.repeat(beta, hw)
            if Cout > 1:
                aux = np.zeros((8 + Cout, out_pad), np.float32)
                aux[0], aux[1] = b_pos, beta_pos
                S = np.zeros((out_pad, Cout), np.float32)   # position -> channel
                for ch in range(Cout):
                    aux[8 + ch, ch * hw:(ch + 1) * hw] = gamma[ch]   # gamma * S^T
                    S[ch * hw:(ch + 1) * hw, ch] = 1.0
                np_args += [M, aux, S]
            else:
                aux = np.zeros((3, out_pad), np.float32)
                aux[0], aux[1] = b_pos, beta_pos
                aux[2, :out_len] = gamma[0]
                np_args += [M, aux]
            plan.append({"kind": "tconv", "cout": Cout, "relu": i != 0,
                         "inv_n": 1.0 / float(B * hw)})
            cur_chw, cur_len, cur_pad = out_chw, out_len, out_pad
            c -= 1
            if i == 0:
                final_chw = out_chw
                break
            # dropout == nn.Identity (use_dropout=False)
        elif name == "pool":
            # TODO(synk): MaxUnpool2d (scatter by pooling indices) not implemented;
            # this configuration uses use_pool=False so the branch never runs.
            pass

    kernel = _make_fused_decoder_kernel(tuple(plan), _BN_EPS)
    jnp_args = [jnp.asarray(a) for a in np_args]     # uploaded once, reused per call
    call = pl.pallas_call(
        kernel,
        out_shape=jax.ShapeDtypeStruct((B, cur_pad), jnp.float32),
        in_specs=[_VMEM] * (1 + len(jnp_args)),
        out_specs=_VMEM,
    )
    final_len = cur_len
    out_chw = final_chw if final_chw is not None else cur_chw

    def forward(x, pool_indices=()):
        del pool_indices                              # use_pool=False
        if x.dtype != jnp.float32:
            x = x.astype(jnp.float32)
        out = call(x, *jnp_args)
        if out.shape[1] != final_len:                 # not needed in this config
            out = out[:, :final_len]
        if out_chw is not None:
            out = out.reshape(x.shape[0], *out_chw)   # already NCHW-flat: free
        return out

    return forward


# ----------------------------------------------------------------------------
# Deterministic parameter init (synthetic; shapes follow the module __init__)
# ----------------------------------------------------------------------------
def init_params(key, decrements, *, K, latent, dense_out):
    ks = jax.random.split(key, 2 + 4 * len(decrements))
    params = {
        "dense": (0.1 * jax.random.normal(ks[0], (dense_out, latent), jnp.float32),
                  0.1 * jax.random.normal(ks[1], (dense_out,), jnp.float32)),
        "tconvs": [],
    }
    j = 2
    for in_dim, out_dim in decrements:
        # nn.ConvTranspose2d(in_channels=out_dim, out_channels=in_dim, K, stride)
        w = 0.2 * jax.random.normal(ks[j], (out_dim, in_dim, K, K), jnp.float32)
        b = 0.1 * jax.random.normal(ks[j + 1], (in_dim,), jnp.float32)
        gamma = 1.0 + 0.1 * jax.random.normal(ks[j + 2], (in_dim,), jnp.float32)
        beta = 0.1 * jax.random.normal(ks[j + 3], (in_dim,), jnp.float32)
        params["tconvs"].append({"w": w, "b": b, "gamma": gamma, "beta": beta})
        j += 4
    return params


# ----------------------------------------------------------------------------
# Pure-JAX reference (independent path: lax.conv_general_dilated) for checking
# ----------------------------------------------------------------------------
def _bn_train_ref(x_nchw, gamma, beta, eps=_BN_EPS):
    mean = jnp.mean(x_nchw, axis=(0, 2, 3), keepdims=True)
    var = jnp.mean((x_nchw - mean) ** 2, axis=(0, 2, 3), keepdims=True)
    xhat = (x_nchw - mean) * jax.lax.rsqrt(var + eps)
    return xhat * gamma[None, :, None, None] + beta[None, :, None, None]


def _conv_transpose_ref(x_nchw, w_pt, b, stride, K, out_hw):
    Hout, Wout = out_hw
    Hin, Win = x_nchw.shape[2], x_nchw.shape[3]
    op_h = Hout - ((Hin - 1) * stride + K)
    op_w = Wout - ((Win - 1) * stride + K)
    w_oihw = jnp.transpose(w_pt[:, :, ::-1, ::-1], (1, 0, 2, 3))
    y = jax.lax.conv_general_dilated(
        x_nchw, w_oihw, window_strides=(1, 1),
        padding=[(K - 1, K - 1 + op_h), (K - 1, K - 1 + op_w)],
        lhs_dilation=(stride, stride),
        dimension_numbers=("NCHW", "OIHW", "NCHW"),
        precision=jax.lax.Precision.HIGHEST)
    return y + b[None, :, None, None]


def reference_forward(params, config, x, shapes):
    c = -1
    for i in range(len(shapes) - 1, -1, -1):
        name, shape = shapes[i]
        if name == "conv":
            p = params["tconvs"][c]
            y = _conv_transpose_ref(x, p["w"], p["b"], config["c_stride"],
                                    config["c_kernel"], (shape[2], shape[3]))
            x = _bn_train_ref(y, p["gamma"], p["beta"])
            if i == 0:
                return x
            x = jnp.maximum(x, 0.0)
            c -= 1
        elif name == "flatten":
            x = x.reshape(-1, shape[1], shape[2], shape[3])
        elif name == "dense":
            wd, bd = params["dense"]
            x = jnp.maximum(
                jnp.dot(x, wd.T, precision=jax.lax.Precision.HIGHEST) + bd, 0.0)
    return x


# ----------------------------------------------------------------------------
if __name__ == "__main__":
    key = jax.random.PRNGKey(0)
    B, latent = 2, 32
    config = {"c_kernel": 3, "c_stride": 2, "use_pool": False, "use_dropout": False}
    decrements = [(1, 4), (4, 8)]            # reversed encoder channel increments

    # Encoder trace (name, shape), consumed backwards by the decoder:
    # 16x16x1 --conv(3,2)--> 7x7x4 --conv(3,2)--> 3x3x8 --flatten--> 72 --dense--> 32
    shapes = [("conv", (B, 1, 16, 16)),
              ("conv", (B, 4, 7, 7)),
              ("flatten", (B, 8, 3, 3)),
              ("dense", (72, latent))]
    pool_indices = []                        # use_pool=False

    params = init_params(key, decrements, K=config["c_kernel"],
                         latent=latent, dense_out=72)
    x = jax.random.normal(jax.random.fold_in(key, 123), (B, latent), jnp.float32)

    decoder = build_decoder(params, config, shapes, batch_size=B)  # one-time fold
    out = jax.block_until_ready(decoder(x, pool_indices))
    assert out.shape == (B, 1, 16, 16), out.shape

    ref = reference_forward(params, config, x, shapes)
    np.testing.assert_allclose(np.asarray(out), np.asarray(ref),
                               atol=5e-3, rtol=5e-3)
    print("KERNEL_OK")
</pallas_src>

<mosaic_0001>
module attributes {stable_mosaic.version = 11 : i64} {
  func.func @kernel(%arg0: memref<2x32xf32, #tpu.memory_space<vmem>>, %arg1: memref<33x128xf32, #tpu.memory_space<vmem>>, %arg2: memref<128x256xf32, #tpu.memory_space<vmem>>, %arg3: memref<12x256xf32, #tpu.memory_space<vmem>>, %arg4: memref<256x4xf32, #tpu.memory_space<vmem>>, %arg5: memref<256x256xf32, #tpu.memory_space<vmem>>, %arg6: memref<3x256xf32, #tpu.memory_space<vmem>>, %arg7: memref<2x256xf32, #tpu.memory_space<vmem>>) attributes {dimension_semantics = [], scalar_prefetch = 0 : i64, scratch_operands = 0 : i64, tpu.core_type = #tpu.core_type<tc>} {
    %c0 = arith.constant 0 : index
    %c0_0 = arith.constant 0 : index
    %0 = vector.load %arg0[%c0, %c0_0] : memref<2x32xf32, #tpu.memory_space<vmem>>, vector<2x32xf32>
    %c0_1 = arith.constant 0 : index
    %c0_2 = arith.constant 0 : index
    %1 = vector.load %arg1[%c0_1, %c0_2] : memref<33x128xf32, #tpu.memory_space<vmem>>, vector<32x128xf32>
    %c32 = arith.constant 32 : index
    %c0_3 = arith.constant 0 : index
    %2 = vector.load %arg1[%c32, %c0_3] : memref<33x128xf32, #tpu.memory_space<vmem>>, vector<1x128xf32>
    %cst = arith.constant dense<0.000000e+00> : vector<2x128xf32>
    %3 = tpu.matmul %0, %1, %cst {dimension_numbers = #tpu.dot_dimension_numbers<[1], [0], [0], [1], [0, 0, 1, 1], [], []>} : vector<2x32xf32>, vector<32x128xf32>, vector<2x128xf32> -> vector<2x128xf32>
    %4 = vector.broadcast %2 : vector<1x128xf32> to vector<2x128xf32>
    %5 = arith.addf %3, %4 : vector<2x128xf32>
    %cst_4 = arith.constant 0.000000e+00 : f32
    %6 = vector.broadcast %cst_4 : f32 to vector<2x128xf32>
    %7 = arith.maximumf %5, %6 : vector<2x128xf32>
    %c0_5 = arith.constant 0 : index
    %c0_6 = arith.constant 0 : index
    %8 = vector.load %arg3[%c0_5, %c0_6] : memref<12x256xf32, #tpu.memory_space<vmem>>, vector<1x256xf32>
    %c1 = arith.constant 1 : index
    %c0_7 = arith.constant 0 : index
    %9 = vector.load %arg3[%c1, %c0_7] : memref<12x256xf32, #tpu.memory_space<vmem>>, vector<1x256xf32>
    %c0_8 = arith.constant 0 : index
    %c0_9 = arith.constant 0 : index
    %10 = vector.load %arg2[%c0_8, %c0_9] : memref<128x256xf32, #tpu.memory_space<vmem>>, vector<128x256xf32>
    %cst_10 = arith.constant dense<0.000000e+00> : vector<2x256xf32>
    %11 = tpu.matmul %7, %10, %cst_10 {dimension_numbers = #tpu.dot_dimension_numbers<[1], [0], [0], [1], [0, 0, 1, 1], [], []>} : vector<2x128xf32>, vector<128x256xf32>, vector<2x256xf32> -> vector<2x256xf32>
    %12 = vector.broadcast %8 : vector<1x256xf32> to vector<2x256xf32>
    %13 = arith.addf %11, %12 : vector<2x256xf32>
    %cst_11 = arith.constant dense<0.000000e+00> : vector<256xf32>
    %14 = vector.multi_reduction <add>, %13, %cst_11 [0] : vector<2x256xf32> to vector<256xf32>
    %15 = vector.shape_cast %14 : vector<256xf32> to vector<1x256xf32>
    %16 = arith.mulf %13, %13 : vector<2x256xf32>
    %cst_12 = arith.constant dense<0.000000e+00> : vector<256xf32>
    %17 = vector.multi_reduction <add>, %16, %cst_12 [0] : vector<2x256xf32> to vector<256xf32>
    %18 = vector.shape_cast %17 : vector<256xf32> to vector<1x256xf32>
    %19 = tpu.iota {dimensions = array<i32: 0>} : vector<2x256xi32>
    %c0_i32 = arith.constant 0 : i32
    %20 = vector.broadcast %c0_i32 : i32 to vector<2x256xi32>
    %21 = arith.cmpi eq, %19, %20 : vector<2x256xi32>
    %22 = vector.shape_cast %15 : vector<1x256xf32> to vector<1x256xf32>
    %23 = vector.broadcast %22 : vector<1x256xf32> to vector<2x256xf32>
    %24 = vector.shape_cast %18 : vector<1x256xf32> to vector<1x256xf32>
    %25 = vector.broadcast %24 : vector<1x256xf32> to vector<2x256xf32>
    %26 = arith.select %21, %23, %25 : vector<2x256xi1>, vector<2x256xf32>
    %c0_13 = arith.constant 0 : index
    %c0_14 = arith.constant 0 : index
    %27 = vector.load %arg4[%c0_13, %c0_14] : memref<256x4xf32, #tpu.memory_space<vmem>>, vector<256x4xf32>
    %cst_15 = arith.constant dense<0.000000e+00> : vector<2x4xf32>
    %28 = tpu.matmul %26, %27, %cst_15 {dimension_numbers = #tpu.dot_dimension_numbers<[1], [0], [0], [1], [0, 0, 1, 1], [], []>} : vector<2x256xf32>, vector<256x4xf32>, vector<2x4xf32> -> vector<2x4xf32>
    %29 = vector.extract_strided_slice %28 {offsets = [0, 0], sizes = [1, 4], strides = [1, 1]} : vector<2x4xf32> to vector<1x4xf32>
    %cst_16 = arith.constant 0.0102040814 : f32
    %30 = vector.broadcast %cst_16 : f32 to vector<1x4xf32>
    %31 = arith.mulf %29, %30 : vector<1x4xf32>
    %32 = vector.extract_strided_slice %28 {offsets = [1, 0], sizes = [1, 4], strides = [1, 1]} : vector<2x4xf32> to vector<1x4xf32>
    %cst_17 = arith.constant 0.0102040814 : f32
    %33 = vector.broadcast %cst_17 : f32 to vector<1x4xf32>
    %34 = arith.mulf %32, %33 : vector<1x4xf32>
    %35 = arith.mulf %31, %31 : vector<1x4xf32>
    %36 = arith.subf %34, %35 : vector<1x4xf32>
    %cst_18 = arith.constant 0.000000e+00 : f32
    %37 = vector.broadcast %cst_18 : f32 to vector<1x4xf32>
    %38 = arith.maximumf %36, %37 : vector<1x4xf32>
    %cst_19 = arith.constant 9.99999974E-6 : f32
    %39 = vector.broadcast %cst_19 : f32 to vector<1x4xf32>
    %40 = arith.addf %38, %39 : vector<1x4xf32>
    %41 = math.rsqrt %40 : vector<1x4xf32>
    %42 = tpu.iota {dimensions = array<i32: 0>} : vector<2x4xi32>
    %c0_i32_20 = arith.constant 0 : i32
    %43 = vector.broadcast %c0_i32_20 : i32 to vector<2x4xi32>
    %44 = arith.cmpi eq, %42, %43 : vector<2x4xi32>
    %cst_21 = arith.constant 0.000000e+00 : f32
    %45 = vector.broadcast %cst_21 : f32 to vector<1x4xf32>
    %46 = arith.subf %45, %31 : vector<1x4xf32>
    %47 = arith.mulf %46, %41 : vector<1x4xf32>
    %48 = vector.shape_cast %41 : vector<1x4xf32> to vector<1x4xf32>
    %49 = vector.broadcast %48 : vector<1x4xf32> to vector<2x4xf32>
    %50 = vector.shape_cast %47 : vector<1x4xf32> to vector<1x4xf32>
    %51 = vector.broadcast %50 : vector<1x4xf32> to vector<2x4xf32>
    %52 = arith.select %44, %49, %51 : vector<2x4xi1>, vector<2x4xf32>
    %c8 = arith.constant 8 : index
    %c0_22 = arith.constant 0 : index
    %53 = vector.load %arg3[%c8, %c0_22] : memref<12x256xf32, #tpu.memory_space<vmem>>, vector<4x256xf32>
    %cst_23 = arith.constant dense<0.000000e+00> : vector<2x256xf32>
    %54 = tpu.matmul %52, %53, %cst_23 {dimension_numbers = #tpu.dot_dimension_numbers<[1], [0], [0], [1], [0, 0, 1, 1], [], []>} : vector<2x4xf32>, vector<4x256xf32>, vector<2x256xf32> -> vector<2x256xf32>
    %55 = vector.extract_strided_slice %54 {offsets = [0, 0], sizes = [1, 256], strides = [1, 1]} : vector<2x256xf32> to vector<1x256xf32>
    %56 = vector.broadcast %55 : vector<1x256xf32> to vector<2x256xf32>
    %57 = arith.mulf %13, %56 : vector<2x256xf32>
    %58 = vector.extract_strided_slice %54 {offsets = [1, 0], sizes = [1, 256], strides = [1, 1]} : vector<2x256xf32> to vector<1x256xf32>
    %59 = vector.broadcast %58 : vector<1x256xf32> to vector<2x256xf32>
    %60 = arith.addf %57, %59 : vector<2x256xf32>
    %61 = vector.broadcast %9 : vector<1x256xf32> to vector<2x256xf32>
    %62 = arith.addf %60, %61 : vector<2x256xf32>
    %cst_24 = arith.constant 0.000000e+00 : f32
    %63 = vector.broadcast %cst_24 : f32 to vector<2x256xf32>
    %64 = arith.maximumf %62, %63 : vector<2x256xf32>
    %c0_25 = arith.constant 0 : index
    %c0_26 = arith.constant 0 : index
    %65 = vector.load %arg6[%c0_25, %c0_26] : memref<3x256xf32, #tpu.memory_space<vmem>>, vector<1x256xf32>
    %c1_27 = arith.constant 1 : index
    %c0_28 = arith.constant 0 : index
    %66 = vector.load %arg6[%c1_27, %c0_28] : memref<3x256xf32, #tpu.memory_space<vmem>>, vector<1x256xf32>
    %c0_29 = arith.constant 0 : index
    %c0_30 = arith.constant 0 : index
    %67 = vector.load %arg5[%c0_29, %c0_30] : memref<256x256xf32, #tpu.memory_space<vmem>>, vector<256x256xf32>
    %cst_31 = arith.constant dense<0.000000e+00> : vector<2x256xf32>
    %68 = tpu.matmul %64, %67, %cst_31 {dimension_numbers = #tpu.dot_dimension_numbers<[1], [0], [0], [1], [0, 0, 1, 1], [], []>} : vector<2x256xf32>, vector<256x256xf32>, vector<2x256xf32> -> vector<2x256xf32>
    %69 = vector.broadcast %65 : vector<1x256xf32> to vector<2x256xf32>
    %70 = arith.addf %68, %69 : vector<2x256xf32>
    %cst_32 = arith.constant dense<0.000000e+00> : vector<256xf32>
    %71 = vector.multi_reduction <add>, %70, %cst_32 [0] : vector<2x256xf32> to vector<256xf32>
    %72 = vector.shape_cast %71 : vector<256xf32> to vector<1x256xf32>
    %73 = arith.mulf %70, %70 : vector<2x256xf32>
    %cst_33 = arith.constant dense<0.000000e+00> : vector<256xf32>
    %74 = vector.multi_reduction <add>, %73, %cst_33 [0] : vector<2x256xf32> to vector<256xf32>
    %75 = vector.shape_cast %74 : vector<256xf32> to vector<1x256xf32>
    %cst_34 = arith.constant dense<0.000000e+00> : vector<1xf32>
    %76 = vector.multi_reduction <add>, %72, %cst_34 [1] : vector<1x256xf32> to vector<1xf32>
    %77 = vector.shape_cast %76 : vector<1xf32> to vector<1x1xf32>
    %cst_35 = arith.constant dense<0.000000e+00> : vector<1xf32>
    %78 = vector.multi_reduction <add>, %75, %cst_35 [1] : vector<1x256xf32> to vector<1xf32>
    %79 = vector.shape_cast %78 : vector<1xf32> to vector<1x1xf32>
    %cst_36 = arith.constant 0.001953125 : f32
    %80 = vector.broadcast %cst_36 : f32 to vector<1x1xf32>
    %81 = arith.mulf %77, %80 : vector<1x1xf32>
    %cst_37 = arith.constant 0.001953125 : f32
    %82 = vector.broadcast %cst_37 : f32 to vector<1x1xf32>
    %83 = arith.mulf %79, %82 : vector<1x1xf32>
    %84 = arith.mulf %81, %81 : vector<1x1xf32>
    %85 = arith.subf %83, %84 : vector<1x1xf32>
    %cst_38 = arith.constant 0.000000e+00 : f32
    %86 = vector.broadcast %cst_38 : f32 to vector<1x1xf32>
    %87 = arith.maximumf %85, %86 : vector<1x1xf32>
    %cst_39 = arith.constant 9.99999974E-6 : f32
    %88 = vector.broadcast %cst_39 : f32 to vector<1x1xf32>
    %89 = arith.addf %87, %88 : vector<1x1xf32>
    %90 = math.rsqrt %89 : vector<1x1xf32>
    %c2 = arith.constant 2 : index
    %c0_40 = arith.constant 0 : index
    %91 = vector.load %arg6[%c2, %c0_40] : memref<3x256xf32, #tpu.memory_space<vmem>>, vector<1x256xf32>
    %92 = vector.broadcast %81 : vector<1x1xf32> to vector<2x256xf32>
    %93 = arith.subf %70, %92 : vector<2x256xf32>
    %94 = vector.broadcast %90 : vector<1x1xf32> to vector<2x256xf32>
    %95 = arith.mulf %93, %94 : vector<2x256xf32>
    %96 = vector.broadcast %91 : vector<1x256xf32> to vector<2x256xf32>
    %97 = arith.mulf %95, %96 : vector<2x256xf32>
    %98 = vector.broadcast %66 : vector<1x256xf32> to vector<2x256xf32>
    %99 = arith.addf %97, %98 : vector<2x256xf32>
    %c0_41 = arith.constant 0 : index
    %c0_42 = arith.constant 0 : index
    %100 = vector.load %arg7[%c0_41, %c0_42] : memref<2x256xf32, #tpu.memory_space<vmem>>, vector<2x256xf32>
    tpu.vector_store %arg7[%c0_41, %c0_42], %99 {strides = array<i32>} : memref<2x256xf32, #tpu.memory_space<vmem>>, vector<2x256xf32>,
    return
  }
}

</mosaic_0001>

<bundles_post_ra>
// kernel: tpu_custom_call.1
= control target key start
LH: loop header
LB: loop body
LE: loop exit
PB: predicated region body
PF: predicated region fallthrough
CT: control target
= control target key end

     0   :  { %12 = vsyncpa [#allocation3], 0  ;;  %s1109_s0 = inlined_call_operand.hbm [shape: f32[2,32], index: 0, kind: input, shape index: {}]   ;;  %s1110_s1 = inlined_call_operand.hbm [shape: f32[33,128], index: 1, kind: input, shape index: {}]   ;;  %s1111_s2 = inlined_call_operand.vmem [shape: f32[128,256], index: 2, kind: input, shape index: {}]   ;;  %s1112_s3 = inlined_call_operand.hbm [shape: f32[12,256], index: 3, kind: input, shape index: {}]   ;;  %s1113_s4 = inlined_call_operand.vmem [shape: f32[256,4], index: 4, kind: input, shape index: {}]   ;;  %s1114_s5 = inlined_call_operand.hbm [shape: f32[256,256], index: 5, kind: input, shape index: {}]   ;;  %s1115_s6 = inlined_call_operand.vmem [shape: f32[3,256], index: 6, kind: input, shape index: {}]   ;;  %s1116_s7 = inlined_call_operand.hbm [shape: f32[2,256], index: 7, kind: output, shape index: {}]  }
   0x1   :  { %13 = vsyncpa [#allocation6], 0 }
   0x2   :  { %14 = vsyncpa [#allocation9], 0  ;;  %s31_s26 = sshll.u32 %s1110_s1, 4  ;;  %s32_s26 = int_to_ptr.hbm [resolvable:$true] %s31_s26 }
   0x3   :  { %15 = vsyncpa [#allocation4], 0  ;;  %s802_s27 = smov [#allocation5]   ;;  %s21_s8 = sshll.u32 %s1109_s0, 4  ;;  %s22_s8 = int_to_ptr.hbm [resolvable:$true] %s21_s8 }
   0x4   :  { %s33_s28 = sshll.u32 %s802_s27, 4  ;;  %s803_s9 = smov 128   ;;  %s34_s28 = int_to_ptr.vmem [resolvable:$true] %s33_s28 }
   0x5   :  { %s804_s10 = smov 8   ;;  %s805_s11 = smov [#allocation2]  }
   0x6   :  { %39 = dma.hbm_to_vmem [thread:$0]  %s32_s26, 640, %s34_s28, [#allocation6], %s803_s9, %s803_s9, %s804_s10  }
   0x7   :  { %s23_s12 = sshll.u32 %s805_s11, 4  ;;  %s46_s15 = sshll.u32 %s1112_s3, 4  ;;  %s24_s12 = int_to_ptr.vmem [resolvable:$true] %s23_s12  ;;  %s47_s15 = int_to_ptr.hbm [resolvable:$true] %s46_s15 }
   0x8   :  { %26 = dma.hbm_to_vmem [thread:$0]  %s22_s8, 32, %s24_s12, [#allocation3]  }
   0x9   :  { %s806_s1 = smov [#allocation7]   ;;  %s61_s0 = sshll.u32 %s1114_s5, 4  ;;  %s62_s0 = int_to_ptr.hbm [resolvable:$true] %s61_s0 }
   0xa   :  { %s48_s16 = sshll.u32 %s806_s1, 4  ;;  %s807_s19 = smov 256   ;;  %s49_s16 = int_to_ptr.vmem [resolvable:$true] %s48_s16 }
   0xb   :  { %s808_s20 = smov 16   ;;  %s809_s21 = smov [#allocation8]  }
   0xc   :  { %54 = dma.hbm_to_vmem [thread:$0]  %s47_s15, 512, %s49_s16, [#allocation6], %s807_s19, %s807_s19, %s808_s20  }
   0xd   :  { %s63_s22 = sshll.u32 %s809_s21, 4  ;;  %s64_s22 = int_to_ptr.vmem [resolvable:$true] %s63_s22 }
   0xe   :  { %69 = dma.hbm_to_vmem [thread:$0]  %s62_s0, 8192, %s64_s22, [#allocation9], %s807_s19, %s807_s19, %s808_s20  }
   0xf   :  { %794 = dma.done.wait [#allocation3], 32  }
  0x10   :  { %795 = vsyncadd [#allocation3], 4294967264 }
  0x11   :  { %796 = dma.done.wait [#allocation6], 1152  }
  0x12   :  { %797 = vsyncadd [#allocation6], 4294966144 }
  0x13   :  { %798 = dma.done.wait [#allocation9], 8192  }
  0x14   :  { %799 = vsyncadd [#allocation9], 4294959104  ;;  %v92_v0 = vld [vmem:[#allocation5 + $0x18] sm:$0xff]  ;;  %v91_v1 = vld [vmem:[#allocation5 + $0x10] sm:$0xff]  ;;  %vm95_vm0 = vcmask 261120   ;;  %vm200_vm1 = vcmask 1041408  }
  0x15   :  { %111 = vmatpush.msra.mxu0 %v92_v0  ;;  %v90_v2 = vld [vmem:[#allocation5 + $0x8] sm:$0xff]  ;;  %v154_v4 = vld [vmem:[%s1111_s2 + $0xf8] sm:$0xff]  ;;  %v151_v5 = vld [vmem:[%s1111_s2 + $0xe0] sm:$0xff]  ;;  %vm340_vm3 = vcmask 1043456   ;;  %vm336_vm7 = vcmask 31744   ;;  %s810_s0 = smov [#allocation10]  }
  0x16   :  { %v153_v3 = vld [vmem:[%s1111_s2 + $0xf0] sm:$0xff]  ;;  %v152_v6 = vld [vmem:[%s1111_s2 + $0xe8] sm:$0xff]  ;;  %180 = vmatpush.msra.mxu2 %v154_v4  ;;  %v150_v9 = vld [vmem:[%s1111_s2 + $0xd8] sm:$0xff]  ;;  %s639_s19 = sshll.u32 %s810_s0, 4  ;;  %s640_s19 = int_to_ptr.vmem [resolvable:$true] %s639_s19 }
  0x17   :  { %160 = vmatpush.msra.mxu1 %v153_v3  ;;  %112 = vmatpush.msra.mxu0 %v91_v1  ;;  %v149_v7 = vld [vmem:[%s1111_s2 + $0xd0] sm:$0xff]  ;;  %v89_v8 = vld [vmem:[#allocation5] sm:$0xff]  ;;  %v88_v10 = vld [vmem:[#allocation2] sm:$0x3] }
  0x18   :  { %181 = vmatpush.msra.mxu2 %v152_v6  ;;  %v147_v11 = vld [vmem:[%s1111_s2 + $0xc0] sm:$0xff]  ;;  %v148_v12 = vld [vmem:[%s1111_s2 + $0xc8] sm:$0xff]  ;;  %v145_v13 = vld [vmem:[%s1111_s2 + $0xb0] sm:$0xff] }
  0x19   :  { %161 = vmatpush.msra.mxu1 %v151_v5  ;;  %113 = vmatpush.msra.mxu0 %v90_v2  ;;  %v146_v14 = vld [vmem:[%s1111_s2 + $0xb8] sm:$0xff]  ;;  %v143_v15 = vld [vmem:[%s1111_s2 + $0xa0] sm:$0xff]  ;;  %v144_v16 = vld [vmem:[%s1111_s2 + $0xa8] sm:$0xff] }
  0x1a   :  { %182 = vmatpush.msra.mxu2 %v150_v9  ;;  %v141_v17 = vld [vmem:[%s1111_s2 + $0x90] sm:$0xff]  ;;  %v142_v18 = vld [vmem:[%s1111_s2 + $0x98] sm:$0xff]  ;;  %v139_v19 = vld [vmem:[%s1111_s2 + $0x80] sm:$0xff] }
  0x1b   :  { %162 = vmatpush.msra.mxu1 %v149_v7  ;;  %114 = vmatpush.msra.mxu0 %v89_v8  ;;  %v140_v20 = vld [vmem:[%s1111_s2 + $0x88] sm:$0xff]  ;;  %v137_v21 = vld [vmem:[%s1111_s2 + $0x70] sm:$0xff]  ;;  %v138_v22 = vld [vmem:[%s1111_s2 + $0x78] sm:$0xff] }
  0x1c   :  { %653 = vmatmul.msk.f32.vlgmr.msra.gmra.mxu0 %vm95_vm0, %v88_v10  ;;  %183 = vmatpush.msra.mxu2 %v148_v12  ;;  %v135_v23 = vld [vmem:[%s1111_s2 + $0x60] sm:$0xff]  ;;  %v136_v24 = vld [vmem:[%s1111_s2 + $0x68] sm:$0xff]  ;;  %v133_v25 = vld [vmem:[%s1111_s2 + $0x50] sm:$0xff] }
  0x1d   :  { %163 = vmatpush.msra.mxu1 %v147_v11  ;;  %v134_v26 = vld [vmem:[%s1111_s2 + $0x58] sm:$0xff]  ;;  %v131_v27 = vld [vmem:[%s1111_s2 + $0x40] sm:$0xff]  ;;  %v132_v28 = vld [vmem:[%s1111_s2 + $0x48] sm:$0xff] }
  0x1e   :  { %184 = vmatpush.msra.mxu2 %v146_v14  ;;  %v129_v29 = vld [vmem:[%s1111_s2 + $0x30] sm:$0xff]  ;;  %v130_v30 = vld [vmem:[%s1111_s2 + $0x38] sm:$0xff]  ;;  %v127_v31 = vld [vmem:[%s1111_s2 + $0x20] sm:$0xff] }
  0x1f   :  { %164 = vmatpush.msra.mxu1 %v145_v13  ;;  %v128_v32 = vld [vmem:[%s1111_s2 + $0x28] sm:$0xff]  ;;  %v125_v33 = vld [vmem:[%s1111_s2 + $0x10] sm:$0xff]  ;;  %v126_v34 = vld [vmem:[%s1111_s2 + $0x18] sm:$0xff] }
  0x20   :  { %185 = vmatpush.msra.mxu2 %v144_v16  ;;  %v123_v35 = vld [vmem:[%s1111_s2] sm:$0xff]  ;;  %v124_v36 = vld [vmem:[%s1111_s2 + $0x8] sm:$0xff]  ;;  %v251_v37 = vld [vmem:[%s1113_s4 + $0x78] sm:$0xff] }
  0x21   :  { %165 = vmatpush.msra.mxu1 %v143_v15  ;;  %v250_v38 = vld [vmem:[%s1113_s4 + $0x70] sm:$0xff]  ;;  %268 = vmatpush.msra.mxu3 %v251_v37  ;;  %v267_v39 = vld [vmem:[%s1113_s4 + $0xf8] sm:$0xff]  ;;  %v249_v40 = vld [vmem:[%s1113_s4 + $0x68] sm:$0xff] }
  0x22   :  { %186 = vmatpush.msra.mxu2 %v142_v18  ;;  %288 = vmatpush.msrb.mxu0 %v267_v39  ;;  %v266_v41 = vld [vmem:[%s1113_s4 + $0xf0] sm:$0xff]  ;;  %v265_v42 = vld [vmem:[%s1113_s4 + $0xe8] sm:$0xff]  ;;  %v248_v43 = vld [vmem:[%s1113_s4 + $0x60] sm:$0xff] }
  0x23   :  { %166 = vmatpush.msra.mxu1 %v141_v17  ;;  %269 = vmatpush.msra.mxu3 %v250_v38  ;;  %v247_v44 = vld [vmem:[%s1113_s4 + $0x58] sm:$0xff]  ;;  %v246_v45 = vld [vmem:[%s1113_s4 + $0x50] sm:$0xff]  ;;  %v669_v46 = vld [vmem:[#allocation5 + $0x20] ss:$0 sm:$0xff] }
  0x24   :  { %187 = vmatpush.msra.mxu2 %v140_v20  ;;  %289 = vmatpush.msrb.mxu0 %v266_v41  ;;  %v245_v50 = vld [vmem:[%s1113_s4 + $0x48] sm:$0xff]  ;;  %v264_v51 = vld [vmem:[%s1113_s4 + $0xe0] sm:$0xff]  ;;  %v263_v53 = vld [vmem:[%s1113_s4 + $0xd8] sm:$0xff] }
  0x25   :  { %167 = vmatpush.msra.mxu1 %v139_v19  ;;  %270 = vmatpush.msra.mxu3 %v249_v40  ;;  %v244_v52 = vld [vmem:[%s1113_s4 + $0x40] sm:$0xff]  ;;  %v243_v54 = vld [vmem:[%s1113_s4 + $0x38] sm:$0xff]  ;;  %v262_v55 = vld [vmem:[%s1113_s4 + $0xd0] sm:$0xff] }
  0x26   :  { %188 = vmatpush.msra.mxu2 %v138_v22  ;;  %290 = vmatpush.msrb.mxu0 %v265_v42  ;;  %v242_v56 = vld [vmem:[%s1113_s4 + $0x30] sm:$0xff]  ;;  %v261_v57 = vld [vmem:[%s1113_s4 + $0xc8] sm:$0xff]  ;;  %v260_v59 = vld [vmem:[%s1113_s4 + $0xc0] sm:$0xff]  ;;  %v231_v22 = vlaneseq }
  0x27   :  { %168 = vmatpush.msra.mxu1 %v137_v21  ;;  %271 = vmatpush.msra.mxu3 %v248_v43  ;;  %v241_v58 = vld [vmem:[%s1113_s4 + $0x28] sm:$0xff]  ;;  %v240_v60 = vld [vmem:[%s1113_s4 + $0x20] sm:$0xff]  ;;  %v259_v61 = vld [vmem:[%s1113_s4 + $0xb8] sm:$0xff] }
  0x28   :  { %189 = vmatpush.msra.mxu2 %v136_v24  ;;  %291 = vmatpush.msrb.mxu0 %v264_v51  ;;  %v239_v62 = vld [vmem:[%s1113_s4 + $0x18] sm:$0xff]  ;;  %v258_v63 = vld [vmem:[%s1113_s4 + $0xb0] sm:$0xff]  ;;  %v257_v1 = vld [vmem:[%s1113_s4 + $0xa8] sm:$0xff] }
  0x29   :  { %169 = vmatpush.msra.mxu1 %v135_v23  ;;  %272 = vmatpush.msra.mxu3 %v247_v44  ;;  %v238_v0 = vld [vmem:[%s1113_s4 + $0x10] sm:$0xff]  ;;  %v237_v2 = vld [vmem:[%s1113_s4 + $0x8] sm:$0xff]  ;;  %v256_v3 = vld [vmem:[%s1113_s4 + $0xa0] sm:$0xff] }
  0x2a   :  { %190 = vmatpush.msra.mxu2 %v134_v26  ;;  %292 = vmatpush.msrb.mxu0 %v263_v53  ;;  %v236_v4 = vld [vmem:[%s1113_s4] sm:$0xff]  ;;  %v255_v5 = vld [vmem:[%s1113_s4 + $0x98] sm:$0xff]  ;;  %v254_v6 = vld [vmem:[%s1113_s4 + $0x90] sm:$0xff] }
  0x2b   :  { %170 = vmatpush.msra.mxu1 %v133_v25  ;;  %273 = vmatpush.msra.mxu3 %v246_v45  ;;  %v253_v7 = vld [vmem:[%s1113_s4 + $0x88] sm:$0xff]  ;;  %v252_v8 = vld [vmem:[%s1113_s4 + $0x80] sm:$0xff] }
  0x2c   :  { %191 = vmatpush.msra.mxu2 %v132_v28  ;;  %293 = vmatpush.msrb.mxu0 %v262_v55  ;;  %v120_v9 = vld [vmem:[#allocation7] ss:$8 sm:$0x3]  ;;  %v334_v55 = vld [vmem:[#allocation7 + $0x10] sm:$0xf] }
  0x2d   :  { %171 = vmatpush.msra.mxu1 %v131_v27  ;;  %274 = vmatpush.msra.mxu3 %v245_v50  ;;  %v156_v10 = vperm.slane %v120_v9, 0  ;;  %v157_v15 = vperm.slane %v120_v9, 1  ;;  %v465_v9 = vld [vmem:[#allocation8 + $0x1d0] sm:$0xff] }
  0x2e   :  { %192 = vmatpush.msra.mxu2 %v130_v30  ;;  %294 = vmatpush.msrb.mxu0 %v261_v57 }
  0x2f   :  { %172 = vmatpush.msra.mxu1 %v129_v29  ;;  %275 = vmatpush.msra.mxu3 %v244_v52 }
  0x30   :  { %193 = vmatpush.msra.mxu2 %v128_v32  ;;  %295 = vmatpush.msrb.mxu0 %v260_v59  ;;  %v438_v59 = vld [vmem:[#allocation8 + $0xf8] sm:$0xff] }
  0x31   :  { %173 = vmatpush.msra.mxu1 %v127_v31  ;;  %276 = vmatpush.msra.mxu3 %v243_v54  ;;  %v1069_v31 = vshrl.u32 %v231_v22, 7  ;;  %v335_v54 = vld [vmem:[#allocation7 + $0x18] sm:$0xf] }
  0x32   :  { %194 = vmatpush.msra.mxu2 %v126_v34  ;;  %296 = vmatpush.msrb.mxu0 %v259_v61  ;;  %v426_v22 = vld [vmem:[#allocation8 + $0x98] sm:$0xff] }
  0x33   :  { %174 = vmatpush.msra.mxu1 %v125_v33  ;;  %277 = vmatpush.msra.mxu3 %v242_v56  ;;  %vm233_vm2 = vcmp.eq.s32.totalorder %v1069_v31, 0  ;;  %v413_v31 = vld [vmem:[#allocation8 + $0x30] sm:$0xff] }
  0x34   :  { %195 = vmatpush.msra.mxu2 %v124_v36  ;;  %297 = vmatpush.msrb.mxu0 %v258_v63  ;;  %v433_v63 = vld [vmem:[#allocation8 + $0xd0] sm:$0xff] }
  0x35   :  { %175 = vmatpush.msra.mxu1 %v123_v35  ;;  %278 = vmatpush.msra.mxu3 %v241_v58  ;;  %v437_v58 = vld [vmem:[#allocation8 + $0xf0] sm:$0xff] }
  0x36   :  { %298 = vmatpush.msrb.mxu0 %v257_v1  ;;  %656 = vmatpush.msk.msrb.mxu2 %vm340_vm3, %v335_v54  ;;  %v469_v1 = vld [vmem:[#allocation8 + $0x1f0] sm:$0xff]  ;;  %v454_v54 = vld [vmem:[#allocation8 + $0x178] sm:$0xff] }
  0x37   :  { %279 = vmatpush.msra.mxu3 %v240_v60  ;;  %654 = vmatpush.msk.msrb.mxu1 %vm340_vm3, %v334_v55  ;;  %v435_v60 = vld [vmem:[#allocation8 + $0xe0] sm:$0xff] }
  0x38   :  { %299 = vmatpush.msrb.mxu0 %v256_v3  ;;  %v470_v3 = vld [vmem:[#allocation8 + $0x1f8] sm:$0xff]  ;;  %v451_v55 = vld [vmem:[#allocation8 + $0x160] sm:$0xff] }
  0x39   :  { %280 = vmatpush.msra.mxu3 %v239_v62  ;;  %v436_v62 = vld [vmem:[#allocation8 + $0xe8] sm:$0xff] }
  0x3a   :  { %300 = vmatpush.msrb.mxu0 %v255_v5  ;;  %v431_v5 = vld [vmem:[#allocation8 + $0xc0] sm:$0xff] }
  0x3b   :  { %281 = vmatpush.msra.mxu3 %v238_v0  ;;  %v434_v0 = vld [vmem:[#allocation8 + $0xd8] sm:$0xff] }
  0x3c   :  { %301 = vmatpush.msrb.mxu0 %v254_v6  ;;  %v432_v6 = vld [vmem:[#allocation8 + $0xc8] sm:$0xff] }
  0x3d   :  { %282 = vmatpush.msra.mxu3 %v237_v2 }
  0x3e   :  { %302 = vmatpush.msrb.mxu0 %v253_v7  ;;  %v468_v7 = vld [vmem:[#allocation8 + $0x1e8] sm:$0xff] }
  0x3f   :  { %283 = vmatpush.msra.mxu3 %v236_v4  ;;  %v467_v4 = vld [vmem:[#allocation8 + $0x1e0] sm:$0xff] }
  0x40   :  { %303 = vmatpush.msrb.mxu0 %v252_v8 }
  0x41   :  { %476 = vmatpush.msrb.mxu3 %v437_v58  ;;  %v411_v58 = vld [vmem:[#allocation8 + $0x20] sm:$0xff] }
  0x42   :  { %496 = vmatpush.msra.mxu0 %v469_v1  ;;  %v448_v1 = vld [vmem:[#allocation8 + $0x148] sm:$0xff] }
  0x43   :  { %477 = vmatpush.msrb.mxu3 %v435_v60  ;;  %v412_v60 = vld [vmem:[#allocation8 + $0x28] sm:$0xff] }
  0x44   :  { %497 = vmatpush.msra.mxu0 %v467_v4  ;;  %v408_v4 = vld [vmem:[#allocation8 + $0x8] sm:$0xff] }
  0x45   :  { %478 = vmatpush.msrb.mxu3 %v433_v63  ;;  %v447_v63 = vld [vmem:[#allocation8 + $0x140] sm:$0xff] }
  0x46   :  { %498 = vmatpush.msra.mxu0 %v465_v9  ;;  %v442_v9 = vld [vmem:[#allocation8 + $0x118] sm:$0xff] }
  0x47   :  { %479 = vmatpush.msrb.mxu3 %v431_v5  ;;  %v446_v5 = vld [vmem:[#allocation8 + $0x138] sm:$0xff] }
  0x99   :  { %v116_v47 = vpop.f32.mrf.mxu0 }
  0x9a   :  { %v117_v48 = vadd.f32 %v669_v46, %v116_v47 }
  0x9c   :  { %v119_v49 = vmax.f32 %v117_v48, 0.0 }
  0x9e   :  { %176 = vmatmul.f32.vlgmr.msra.gmra.mxu1 %v119_v49  ;;  %196 = vmatmul.f32.vlgmr.msra.gmra.mxu2 %v119_v49 }
  0x9f   :  { %516 = vmatpush.msra.mxu1 %v438_v59  ;;  %536 = vmatpush.msra.mxu2 %v470_v3  ;;  %v449_v59 = vld [vmem:[#allocation8 + $0x150] sm:$0xff] }
  0xa0   :  { %v445_v3 = vld [vmem:[#allocation8 + $0x130] sm:$0xff] }
  0xa1   :  { %517 = vmatpush.msra.mxu1 %v436_v62  ;;  %537 = vmatpush.msra.mxu2 %v468_v7  ;;  %v409_v62 = vld [vmem:[#allocation8 + $0x10] sm:$0xff]  ;;  %v444_v7 = vld [vmem:[#allocation8 + $0x128] sm:$0xff] }
  0xa3   :  { %518 = vmatpush.msra.mxu1 %v434_v0  ;;  %v410_v0 = vld [vmem:[#allocation8 + $0x18] sm:$0xff] }
  0xa5   :  { %519 = vmatpush.msra.mxu1 %v432_v6  ;;  %v443_v6 = vld [vmem:[#allocation8 + $0x120] sm:$0xff] }
 0x11b   :  { %v177_v11 = vpop.f32.mrf.mxu1 }
 0x11c   :  { %v1055_v12 = vadd.f32 %v177_v11, %v156_v10  ;;  %v466_v10 = vld [vmem:[#allocation8 + $0x1d8] sm:$0xff]  ;;  %v429_v11 = vld [vmem:[#allocation8 + $0xb0] sm:$0xff] }
 0x11d   :  { %538 = vmatpush.msra.mxu2 %v466_v10  ;;  %480 = vmatpush.msrb.mxu3 %v429_v11  ;;  %v439_v10 = vld [vmem:[#allocation8 + $0x100] sm:$0xff]  ;;  %v440_v11 = vld [vmem:[#allocation8 + $0x108] sm:$0xff] }
 0x11e   :  { %v201_v13 = vsel %vm200_vm1, %v1055_v12, 0.0  ;;  %v215_v14 = vmul.f32 %v1055_v12, %v1055_v12 }
 0x11f   :  { %v202_v16 = vrot.slane %v201_v13, 4 }
 0x120   :  { %v217_v17 = vsel %vm200_vm1, %v215_v14, 0.0  ;;  %v463_v14 = vld [vmem:[#allocation8 + $0x1c0] sm:$0xff] }
 0x121   :  { %v203_v18 = vadd.f32 %v202_v16, %v201_v13  ;;  %v218_v19 = vrot.slane %v217_v17, 4  ;;  %v197_v20 = vpop.f32.mrf.mxu2  ;;  %v430_v13 = vld [vmem:[#allocation8 + $0xb8] sm:$0xff]  ;;  %v427_v16 = vld [vmem:[#allocation8 + $0xa0] sm:$0xff]  ;;  %499 = vmatpush.msra.mxu0 %v463_v14 }
 0x122   :  { %v1062_v21 = vadd.f32 %v197_v20, %v157_v15  ;;  %v464_v15 = vld [vmem:[#allocation8 + $0x1c8] sm:$0xff]  ;;  %520 = vmatpush.msra.mxu1 %v430_v13  ;;  %v425_v20 = vld [vmem:[#allocation8 + $0x90] sm:$0xff]  ;;  %481 = vmatpush.msrb.mxu3 %v427_v16 }
 0x123   :  { %v204_v23 = vrot.slane %v203_v18, 2  ;;  %v219_v24 = vadd.f32 %v218_v19, %v217_v17  ;;  %v428_v17 = vld [vmem:[#allocation8 + $0xa8] sm:$0xff]  ;;  %v462_v19 = vld [vmem:[#allocation8 + $0x1b8] sm:$0xff]  ;;  %539 = vmatpush.msra.mxu2 %v464_v15 }
 0x124   :  { %v208_v25 = vsel %vm200_vm1, %v1062_v21, 0.0  ;;  %v216_v26 = vmul.f32 %v1062_v21, %v1062_v21  ;;  %521 = vmatpush.msra.mxu1 %v428_v17  ;;  %482 = vmatpush.msrb.mxu3 %v425_v20  ;;  %v122_v14 = vld [vmem:[#allocation7 + $0x1] ss:$8 sm:$0x3] }
 0x125   :  { %v209_v27 = vrot.slane %v208_v25, 4  ;;  %v205_v28 = vadd.f32 %v204_v23, %v203_v18  ;;  %v220_v29 = vrot.slane %v219_v24, 2  ;;  %v461_v18 = vld [vmem:[#allocation8 + $0x1b0] sm:$0xff]  ;;  %v459_v23 = vld [vmem:[#allocation8 + $0x1a0] sm:$0xff]  ;;  %540 = vmatpush.msra.mxu2 %v462_v19 }
 0x126   :  { %v224_v30 = vsel %vm200_vm1, %v216_v26, 0.0  ;;  %500 = vmatpush.msra.mxu0 %v461_v18  ;;  %v424_v26 = vld [vmem:[#allocation8 + $0x88] sm:$0xff]  ;;  %522 = vmatpush.msra.mxu1 %v426_v22  ;;  %v396_v18 = vperm.slane %v122_v14, 0 }
 0x127   :  { %v210_v32 = vadd.f32 %v209_v27, %v208_v25  ;;  %v225_v33 = vrot.slane %v224_v30, 4  ;;  %v206_v34 = vrot.slane %v205_v28, 1  ;;  %v221_v35 = vadd.f32 %v220_v29, %v219_v24  ;;  %v460_v24 = vld [vmem:[#allocation8 + $0x1a8] sm:$0xff]  ;;  %v423_v25 = vld [vmem:[#allocation8 + $0x80] sm:$0xff]  ;;  %v458_v29 = vld [vmem:[#allocation8 + $0x198] sm:$0xff] }
 0x128   :  { %501 = vmatpush.msra.mxu0 %v459_v23  ;;  %541 = vmatpush.msra.mxu2 %v460_v24 }
 0x129   :  { %v211_v36 = vrot.slane %v210_v32, 2  ;;  %v226_v37 = vadd.f32 %v225_v33, %v224_v30  ;;  %v222_v38 = vrot.slane %v221_v35, 1  ;;  %v207_v41 = vadd.f32 %v206_v34, %v205_v28  ;;  %v457_v28 = vld [vmem:[#allocation8 + $0x190] sm:$0xff]  ;;  %v422_v33 = vld [vmem:[#allocation8 + $0x78] sm:$0xff]  ;;  %483 = vmatpush.msrb.mxu3 %v423_v25  ;;  %523 = vmatpush.msra.mxu1 %v424_v26 }
 0x12a   :  { %502 = vmatpush.msra.mxu0 %v457_v28  ;;  %542 = vmatpush.msra.mxu2 %v458_v29  ;;  %v397_v26 = vperm.slane %v122_v14, 1 }
 0x12b   :  { %v212_v39 = vadd.f32 %v211_v36, %v210_v32  ;;  %v227_v40 = vrot.slane %v226_v37, 2  ;;  %v223_v42 = vadd.f32 %v222_v38, %v221_v35  ;;  %v421_v32 = vld [vmem:[#allocation8 + $0x70] sm:$0xff]  ;;  %v419_v35 = vld [vmem:[#allocation8 + $0x60] sm:$0xff]  ;;  %v420_v36 = vld [vmem:[#allocation8 + $0x68] sm:$0xff]  ;;  %524 = vmatpush.msra.mxu1 %v422_v33 }
 0x12c   :  { %484 = vmatpush.msrb.mxu3 %v421_v32 }
 0x12d   :  { %v234_v43 = vsel %vm233_vm2, %v207_v41, %v223_v42  ;;  %v213_v44 = vrot.slane %v212_v39, 1  ;;  %v228_v45 = vadd.f32 %v227_v40, %v226_v37  ;;  %525 = vmatpush.msra.mxu1 %v420_v36 }
 0x12e   :  { %284 = vmatmul.f32.vlgmr.msra.gmra.mxu3 %v234_v43 }
 0x12f   :  { %v229_v46 = vrot.slane %v228_v45, 1  ;;  %v214_v47 = vadd.f32 %v213_v44, %v212_v39  ;;  %485 = vmatpush.msrb.mxu3 %v419_v35 }
 0x131   :  { %v230_v48 = vadd.f32 %v229_v46, %v228_v45 }
 0x133   :  { %v235_v49 = vsel %vm233_vm2, %v214_v47, %v230_v48  ;;  %v417_v47 = vld [vmem:[#allocation8 + $0x50] sm:$0xff]  ;;  %v455_v48 = vld [vmem:[#allocation8 + $0x180] sm:$0xff] }
 0x134   :  { %304 = vmatmul.f32.vlgmr.msrb.gmra.mxu0 %v235_v49  ;;  %v418_v49 = vld [vmem:[#allocation8 + $0x58] sm:$0xff]  ;;  %486 = vmatpush.msrb.mxu3 %v417_v47 }
 0x135   :  { %503 = vmatpush.msra.mxu0 %v455_v48  ;;  %526 = vmatpush.msra.mxu1 %v418_v49 }
 0x1b1   :  { %v285_v50 = vpop.f32.mrf.mxu3  ;;  %v305_v51 = vpop.f32.mrf.mxu0 }
 0x1b2   :  { %v306_v52 = vadd.f32 %v305_v51, %v285_v50  ;;  %v456_v50 = vld [vmem:[#allocation8 + $0x188] sm:$0xff]  ;;  %v415_v51 = vld [vmem:[#allocation8 + $0x40] sm:$0xff] }
 0x1b3   :  { %543 = vmatpush.msra.mxu2 %v456_v50  ;;  %487 = vmatpush.msrb.mxu3 %v415_v51 }
 0x1b4   :  { %v1076_v53 = vmul.f32 0.010204081, %v306_v52  ;;  %v453_v52 = vld [vmem:[#allocation8 + $0x170] sm:$0xff] }
 0x1b5   :  { %504 = vmatpush.msra.mxu0 %v453_v52  ;;  %544 = vmatpush.msra.mxu2 %v454_v54 }
 0x1b6   :  { %v309_v56 = vmul.f32 %v1076_v53, %v1076_v53  ;;  %v326_v41 = vsub.f32 0.0, %v1076_v53  ;;  %488 = vmatpush.msrb.mxu3 %v413_v31 }
 0x1b7   :  { %505 = vmatpush.msra.mxu0 %v451_v55 }
 0x1b8   :  { %v311_v57 = vrot.slane %v309_v56, 7  ;;  %v414_v56 = vld [vmem:[#allocation8 + $0x38] sm:$0xff]  ;;  %489 = vmatpush.msrb.mxu3 %v411_v58 }
 0x1b9   :  { %506 = vmatpush.msra.mxu0 %v449_v59 }
 0x1ba   :  { %v313_v61 = vsub.f32 %v1076_v53, %v311_v57  ;;  %v416_v53 = vld [vmem:[#allocation8 + $0x48] sm:$0xff]  ;;  %490 = vmatpush.msrb.mxu3 %v409_v62 }
 0x1bb   :  { %527 = vmatpush.msra.mxu1 %v416_v53  ;;  %v452_v57 = vld [vmem:[#allocation8 + $0x168] sm:$0xff]  ;;  %507 = vmatpush.msra.mxu0 %v447_v63 }
 0x1bc   :  { %v314_v2 = vmax.f32 %v313_v61, 0.0  ;;  %545 = vmatpush.msra.mxu2 %v452_v57  ;;  %v450_v61 = vld [vmem:[#allocation8 + $0x158] sm:$0xff] }
 0x1bd   :  { %528 = vmatpush.msra.mxu1 %v414_v56  ;;  %508 = vmatpush.msra.mxu0 %v445_v3 }
 0x1be   :  { %v315_v8 = vadd.f32 1e-05, %v314_v2  ;;  %546 = vmatpush.msra.mxu2 %v450_v61  ;;  %v407_v2 = vld [vmem:[#allocation8] sm:$0xff] }
 0x1bf   :  { %529 = vmatpush.msra.mxu1 %v412_v60  ;;  %491 = vmatpush.msrb.mxu3 %v407_v2 }
 0x1c0   :  { %670 = vrsqrt.f32 %v315_v8  ;;  %vm322_vm5 = vweird.f32 %v315_v8  ;;  %547 = vmatpush.msra.mxu2 %v448_v1  ;;  %509 = vmatpush.msra.mxu0 %v443_v6 }
 0x1c1   :  { %530 = vmatpush.msra.mxu1 %v410_v0 }
 0x1c2   :  { %548 = vmatpush.msra.mxu2 %v446_v5 }
 0x1c3   :  { %531 = vmatpush.msra.mxu1 %v408_v4 }
 0x1c4   :  { %549 = vmatpush.msra.mxu2 %v444_v7 }
 0x1c6   :  { %v671_v27 = vpop.eup %670  ;;  %550 = vmatpush.msra.mxu2 %v442_v9 }
 0x1c7   :  { %v317_v30 = vmul.f32 %v671_v27, %v315_v8  ;;  %vm323_vm4 = vweird.f32 %v671_v27  ;;  %v441_v8 = vld [vmem:[#allocation8 + $0x110] sm:$0xff] }
 0x1c8   :  { %vm324_vm6 = vmor %vm322_vm5, %vm323_vm4  ;;  %510 = vmatpush.msra.mxu0 %v441_v8  ;;  %551 = vmatpush.msra.mxu2 %v440_v11 }
 0x1c9   :  { %v318_v34 = vmul.f32 %v671_v27, %v317_v30 }
 0x1ca   :  { %511 = vmatpush.msra.mxu0 %v439_v10 }
 0x1cb   :  { %v319_v37 = vmul.f32 0.5, %v318_v34 }
 0x1cd   :  { %v320_v38 = vsub.f32 1.5, %v319_v37 }
 0x1cf   :  { %v321_v39 = vmul.f32 %v671_v27, %v320_v38 }
 0x1d1   :  { %v325_v40 = vsel %vm324_vm6, %v671_v27, %v321_v39 }
 0x1d2   :  { %v328_v42 = vrot.slane %v325_v40, 1  ;;  %v331_v44 = vperm.slane %v325_v40, 1 }
 0x1d4   :  { %v330_v43 = vmul.f32 %v328_v42, %v326_v41 }
 0x1d6   :  { %v332_v45 = vperm.slane %v330_v43, 0 }
 0x1d8   :  { %v333_v46 = vsel %vm233_vm2, %v331_v44, %v332_v45 }
 0x1d9   :  { %655 = vmatmul.msk.f32.vlgmr.msrb.gmra.mxu1 %vm336_vm7, %v333_v46  ;;  %657 = vmatmul.msk.f32.vlgmr.msrb.gmra.mxu2 %vm336_vm7, %v333_v46 }
 0x256   :  { %v364_v13 = vpop.f32.mrf.mxu1 }
 0x257   :  { %v387_v15 = vperm.slane %v364_v13, 0  ;;  %v391_v17 = vperm.slane %v364_v13, 1 }
 0x259   :  { %v389_v16 = vmul.f32 %v387_v15, %v1055_v12  ;;  %v404_v12 = vld [vmem:[%s1115_s6] ss:$4 sm:$0x3] }
 0x25a   :  { %v472_v32 = vperm.slane %v404_v12, 0  ;;  %v473_v34 = vperm.slane %v404_v12, 1 }
 0x25b   :  { %v393_v19 = vadd.f32 %v391_v17, %v389_v16 }
 0x25c   :  { %v384_v20 = vpop.f32.mrf.mxu2 }
 0x25d   :  { %v388_v22 = vperm.slane %v384_v20, 0  ;;  %v400_v23 = vadd.f32 %v396_v18, %v393_v19  ;;  %v392_v25 = vperm.slane %v384_v20, 1 }
 0x25f   :  { %v390_v24 = vmul.f32 %v388_v22, %v1062_v21  ;;  %v402_v27 = vmax.f32 %v400_v23, 0.0  ;;  %v659_v23 = vld [vmem:[%s1115_s6 + $0x2] ss:$4 sm:$0x3] }
 0x261   :  { %v394_v28 = vadd.f32 %v392_v25, %v390_v24  ;;  %492 = vmatmul.f32.vlgmr.msrb.gmra.mxu3 %v402_v27  ;;  %532 = vmatmul.f32.vlgmr.msra.gmra.mxu1 %v402_v27  ;;  %v658_v25 = vld [vmem:[%s1115_s6 + $0x1] ss:$4 sm:$0x3]  ;;  %s641_s6 = sshll.u32 %s1116_s7, 4  ;;  %s642_s6 = int_to_ptr.hbm [resolvable:$true] %s641_s6 }
 0x263   :  { %v401_v29 = vadd.f32 %v397_v26, %v394_v28  ;;  %v615_v28 = vperm.slane %v659_v23, 0 }
 0x265   :  { %v403_v30 = vmax.f32 %v401_v29, 0.0  ;;  %v616_v29 = vperm.slane %v659_v23, 1 }
 0x267   :  { %512 = vmatmul.f32.vlgmr.msra.gmra.mxu0 %v403_v30  ;;  %552 = vmatmul.f32.vlgmr.msra.gmra.mxu2 %v403_v30 }
 0x2de   :  { %v533_v36 = vpop.f32.mrf.mxu1 }
 0x2df   :  { %v534_v38 = vadd.f32 %v533_v36, %v473_v34  ;;  %v622_v36 = vperm.slane %v658_v25, 0 }
 0x2e4   :  { %v493_v33 = vpop.f32.mrf.mxu3  ;;  %v513_v21 = vpop.f32.mrf.mxu0 }
 0x2e5   :  { %v494_v35 = vadd.f32 %v493_v33, %v472_v32  ;;  %v623_v33 = vperm.slane %v658_v25, 1 }
 0x2e7   :  { %v1089_v37 = vadd.f32 %v513_v21, %v494_v35 }
 0x2e9   :  { %v556_v39 = vsel %vm200_vm1, %v1089_v37, 0.0  ;;  %v570_v40 = vmul.f32 %v1089_v37, %v1089_v37 }
 0x2ea   :  { %v557_v41 = vrot.slane %v556_v39, 4  ;;  %v553_v42 = vpop.f32.mrf.mxu2 }
 0x2eb   :  { %v572_v43 = vsel %vm200_vm1, %v570_v40, 0.0  ;;  %v554_v44 = vadd.f32 %v553_v42, %v534_v38 }
 0x2ec   :  { %v573_v45 = vrot.slane %v572_v43, 4  ;;  %v558_v46 = vadd.f32 %v557_v41, %v556_v39 }
 0x2ed   :  { %v563_v47 = vsel %vm200_vm1, %v554_v44, 0.0  ;;  %v571_v48 = vmul.f32 %v554_v44, %v554_v44 }
 0x2ee   :  { %v564_v49 = vrot.slane %v563_v47, 4  ;;  %v559_v50 = vrot.slane %v558_v46, 2  ;;  %v574_v31 = vadd.f32 %v573_v45, %v572_v43 }
 0x2ef   :  { %v579_v51 = vsel %vm200_vm1, %v571_v48, 0.0 }
 0x2f0   :  { %v580_v52 = vrot.slane %v579_v51, 4  ;;  %v560_v53 = vadd.f32 %v559_v50, %v558_v46  ;;  %v565_v54 = vadd.f32 %v564_v49, %v563_v47  ;;  %v575_v59 = vrot.slane %v574_v31, 2 }
 0x2f2   :  { %v566_v55 = vrot.slane %v565_v54, 2  ;;  %v581_v56 = vadd.f32 %v580_v52, %v579_v51  ;;  %v561_v57 = vrot.slane %v560_v53, 1  ;;  %v576_v1 = vadd.f32 %v575_v59, %v574_v31 }
 0x2f4   :  { %v567_v58 = vadd.f32 %v566_v55, %v565_v54  ;;  %v582_v60 = vrot.slane %v581_v56, 2  ;;  %v562_v63 = vadd.f32 %v561_v57, %v560_v53  ;;  %v577_v4 = vrot.slane %v576_v1, 1 }
 0x2f6   :  { %v568_v61 = vrot.slane %v567_v58, 1  ;;  %v583_v62 = vadd.f32 %v582_v60, %v581_v56  ;;  %v578_v6 = vadd.f32 %v577_v4, %v576_v1 }
 0x2f8   :  { %v569_v0 = vadd.f32 %v568_v61, %v567_v58  ;;  %v584_v3 = vrot.slane %v583_v62, 1 }
 0x2fa   :  { %v586_v2 = vadd.f32 %v569_v0, %v562_v63  ;;  %v585_v5 = vadd.f32 %v584_v3, %v583_v62 }
 0x2fc   :  { %587 = vadd.xlane.f32.xlu0 %v586_v2  ;;  %v589_v7 = vadd.f32 %v585_v5, %v578_v6 }
 0x304   :  { %590 = vadd.xlane.f32.xlu0 %v589_v7 }
 0x36f   :  { %v588_v8 = vpop.xlane.xlu0 %587 }
 0x370   :  { %v592_v9 = vmul.f32 0.001953125, %v588_v8 }
 0x372   :  { %v594_v11 = vmul.f32 %v592_v9, %v592_v9  ;;  %v610_v26 = vsub.f32 %v1089_v37, %v592_v9  ;;  %v611_v27 = vsub.f32 %v554_v44, %v592_v9 }
 0x377   :  { %v591_v10 = vpop.xlane.xlu0 %590 }
 0x378   :  { %v593_v13 = vmul.f32 0.001953125, %v591_v10 }
 0x37a   :  { %v595_v14 = vsub.f32 %v593_v13, %v594_v11 }
 0x37c   :  { %v596_v15 = vmax.f32 %v595_v14, 0.0 }
 0x37e   :  { %v597_v16 = vadd.f32 1e-05, %v596_v15 }
 0x380   :  { %672 = vrsqrt.f32 %v597_v16  ;;  %vm604_vm9 = vweird.f32 %v597_v16 }
 0x386   :  { %v673_v17 = vpop.eup %672 }
 0x387   :  { %v599_v18 = vmul.f32 %v673_v17, %v597_v16  ;;  %vm605_vm8 = vweird.f32 %v673_v17 }
 0x388   :  { %vm606_vm10 = vmor %vm604_vm9, %vm605_vm8 }
 0x389   :  { %v600_v19 = vmul.f32 %v673_v17, %v599_v18 }
 0x38b   :  { %v601_v20 = vmul.f32 0.5, %v600_v19 }
 0x38d   :  { %v602_v22 = vsub.f32 1.5, %v601_v20 }
 0x38f   :  { %v603_v24 = vmul.f32 %v673_v17, %v602_v22 }
 0x391   :  { %v607_v30 = vsel %vm606_vm10, %v673_v17, %v603_v24 }
 0x392   :  { %v612_v12 = vmul.f32 %v610_v26, %v607_v30  ;;  %v613_v32 = vmul.f32 %v611_v27, %v607_v30 }
 0x394   :  { %v619_v34 = vmul.f32 %v615_v28, %v612_v12  ;;  %v620_v35 = vmul.f32 %v616_v29, %v613_v32 }
 0x396   :  { %v627_v21 = vadd.f32 %v623_v33, %v620_v35  ;;  %v626_v38 = vadd.f32 %v622_v36, %v619_v34 }
 0x398   :  { %v630_v37 = vrot.slane %v627_v21, 6 }
 0x39a   :  { %v631_v39 = vsel %vm200_vm1, %v626_v38, %v630_v37 }
 0x39b   :  { %633 = vst [vmem:[#allocation10] sm:$0xf] %v631_v39 }
 0x39c   :  { %644 = dma.vmem_to_hbm [thread:$0]  %s640_s19, 64, %s642_s6, [#allocation4]  }
 0x39d   :  { %800 = dma.done.wait [#allocation4], 64  }
 0x39e   :  { %801 = vsyncadd [#allocation4], 4294967232 }
 0x39f   :  { %649 = vsyncpa [#allocation3], 1 }
 0x3a0   :  { %650 = vsyncpa [#allocation6], 1 }
 0x3a1   :  { %651 = vsyncpa [#allocation9], 1 }
 0x3a2   :  { %652 = vsyncpa [#allocation4], 1 }

</bundles_post_ra>
